<compile_context>
chip_gen: v6e
topology: v6e:2x2x1
jax: 0.10.0
libtpu: 0.0.40
codegen_flags: <defaults>
</compile_context>

<pallas_src>
import jax
import jax.numpy as jnp
from jax.experimental import pallas as pl
from jax.experimental.pallas import tpu as pltpu


def _linear_softmax_kernel(x_ref, w_ref, b_ref, o_ref):
    # x_ref: (tb, n_in)   w_ref: (n_in, n_out)   b_ref: (1, n_out)   o_ref: (tb, n_out)
    # MXU matmul with f32 accumulation; operands stay in their native dtype.
    logits = jnp.dot(x_ref[...], w_ref[...], preferred_element_type=jnp.float32)
    logits = logits + b_ref[...].astype(jnp.float32)

    # Softmax over dim=1 (output-feature axis), numerically stable, in f32.
    m = jnp.max(logits, axis=-1, keepdims=True)
    e = jnp.exp(logits - m)                      # EUP
    s = jnp.sum(e, axis=-1, keepdims=True)       # XLU lane reduce (n_out is tiny)
    o_ref[...] = (e / s).astype(o_ref.dtype)


def _choose_block_b(batch, n_in, itemsize):
    # Target ~4 MiB of input rows per block (mem-bound sweet spot: per-step
    # overhead amortized, still comfortably inside scoped VMEM with double
    # buffering), while respecting the (8, 128) rule on the sublane block dim.
    target_rows = max(8, (4 * 1024 * 1024) // max(itemsize * n_in, 1))
    target_rows = min(target_rows, 8192)         # cap sublane extent for tiny n_in
    if target_rows >= batch:
        return batch                              # full-extent block: always legal
    return max(8, (target_rows // 8) * 8)         # multiple of 8; ragged tail via cdiv grid


@jax.jit
def binary_classifier_forward(x, w, b):
    """Forward pass of BinaryClassifier.

    x: (B, n_in)      activations
    w: (n_out, n_in)  PyTorch nn.Linear weight layout
    b: (n_out,)       PyTorch nn.Linear bias
    returns: (B, n_out) softmax probabilities (rows sum to 1)
    """
    B, n_in = x.shape
    n_out = w.shape[0]

    w_t = w.T                    # one-time tiny parameter layout prep -> (n_in, n_out)
    b2 = b.reshape(1, n_out)

    block_b = _choose_block_b(B, n_in, x.dtype.itemsize)
    grid = (pl.cdiv(B, block_b),)   # ragged last block handled by Pallas edge masking

    return pl.pallas_call(
        _linear_softmax_kernel,
        out_shape=jax.ShapeDtypeStruct((B, n_out), x.dtype),
        grid_spec=pltpu.PrefetchScalarGridSpec(
            num_scalar_prefetch=0,
            grid=grid,
            in_specs=[
                pl.BlockSpec((block_b, n_in), lambda i: (i, 0)),  # batch-tiled activations
                pl.BlockSpec((n_in, n_out), lambda i: (0, 0)),    # full weight, resident
                pl.BlockSpec((1, n_out), lambda i: (0, 0)),       # bias, resident
            ],
            out_specs=pl.BlockSpec((block_b, n_out), lambda i: (i, 0)),
        ),
        compiler_params=pltpu.CompilerParams(
            # Batch axis is independent -> shard across TensorCores.
            dimension_semantics=("parallel",),
        ),
    )(x, w_t, b2)


if __name__ == "__main__":
    key = jax.random.PRNGKey(0)
    k1, k2, k3 = jax.random.split(key, 3)

    # Small shapes implied by the module: x is (batch, n_neuron_in).
    B, n_in, n_out = 8, 32, 2
    x = jax.random.normal(k1, (B, n_in), dtype=jnp.float32)
    w = jax.random.normal(k2, (n_out, n_in), dtype=jnp.float32) * 0.1
    b = jax.random.normal(k3, (n_out,), dtype=jnp.float32) * 0.1

    out = binary_classifier_forward(x, w, b)
    out = jax.block_until_ready(out)

    # Pure-JAX reference with the same semantics (Linear + Softmax over dim=1).
    ref_logits = jnp.dot(x, w.T, precision=jax.lax.Precision.HIGHEST) + b
    ref = jax.nn.softmax(ref_logits, axis=1)

    assert out.shape == (B, n_out) and out.dtype == x.dtype
    assert jnp.allclose(out, ref, atol=1e-5, rtol=1e-5), "mismatch vs reference"
    assert jnp.allclose(jnp.sum(out, axis=1), 1.0, atol=1e-5), "softmax rows must sum to 1"

    print("KERNEL_OK")
</pallas_src>

<mosaic_0001>
module attributes {stable_mosaic.version = 11 : i64} {
  func.func @_linear_softmax_kernel(%arg0: i32, %arg1: memref<8x32xf32, #tpu.memory_space<vmem>>, %arg2: memref<32x2xf32, #tpu.memory_space<vmem>>, %arg3: memref<1x2xf32, #tpu.memory_space<vmem>>, %arg4: memref<8x2xf32, #tpu.memory_space<vmem>>) attributes {dimension_semantics = [#tpu.dimension_semantics<parallel>], iteration_bounds = array<i64: 1>, scalar_prefetch = 0 : i64, scratch_operands = 0 : i64, tpu.core_type = #tpu.core_type<tc>, window_params = [{transform_indices = @transform_0, window_bounds = array<i64: 8, 32>}, {pipeline_mode = #tpu.pipeline_mode<synchronous>, transform_indices = @transform_1, window_bounds = array<i64: 32, 2>}, {pipeline_mode = #tpu.pipeline_mode<synchronous>, transform_indices = @transform_2, window_bounds = array<i64: 1, 2>}, {transform_indices = @transform_3, window_bounds = array<i64: 8, 2>}]} {
    %c0 = arith.constant 0 : index
    %c0_0 = arith.constant 0 : index
    %0 = vector.load %arg1[%c0, %c0_0] : memref<8x32xf32, #tpu.memory_space<vmem>>, vector<8x32xf32>
    %c0_1 = arith.constant 0 : index
    %c0_2 = arith.constant 0 : index
    %1 = vector.load %arg2[%c0_1, %c0_2] : memref<32x2xf32, #tpu.memory_space<vmem>>, vector<32x2xf32>
    %cst = arith.constant dense<0.000000e+00> : vector<8x2xf32>
    %2 = tpu.matmul %0, %1, %cst {dimension_numbers = #tpu.dot_dimension_numbers<[1], [0], [0], [1], [0, 0, 1, 1], [], []>} : vector<8x32xf32>, vector<32x2xf32>, vector<8x2xf32> -> vector<8x2xf32>
    %c0_3 = arith.constant 0 : index
    %c0_4 = arith.constant 0 : index
    %3 = vector.load %arg3[%c0_3, %c0_4] : memref<1x2xf32, #tpu.memory_space<vmem>>, vector<1x2xf32>
    %4 = vector.broadcast %3 : vector<1x2xf32> to vector<8x2xf32>
    %5 = arith.addf %2, %4 : vector<8x2xf32>
    %cst_5 = arith.constant dense<0xFF800000> : vector<8xf32>
    %6 = vector.multi_reduction <maximumf>, %5, %cst_5 [1] : vector<8x2xf32> to vector<8xf32>
    %7 = vector.shape_cast %6 : vector<8xf32> to vector<8x1xf32>
    %8 = vector.broadcast %7 : vector<8x1xf32> to vector<8x2xf32>
    %9 = arith.subf %5, %8 : vector<8x2xf32>
    %10 = math.exp %9 : vector<8x2xf32>
    %cst_6 = arith.constant dense<0.000000e+00> : vector<8xf32>
    %11 = vector.multi_reduction <add>, %10, %cst_6 [1] : vector<8x2xf32> to vector<8xf32>
    %12 = vector.shape_cast %11 : vector<8xf32> to vector<8x1xf32>
    %13 = vector.broadcast %12 : vector<8x1xf32> to vector<8x2xf32>
    %14 = arith.divf %10, %13 : vector<8x2xf32>
    %c0_7 = arith.constant 0 : index
    %c0_8 = arith.constant 0 : index
    %15 = vector.load %arg4[%c0_7, %c0_8] : memref<8x2xf32, #tpu.memory_space<vmem>>, vector<8x2xf32>
    tpu.vector_store %arg4[%c0_7, %c0_8], %14 {strides = array<i32>} : memref<8x2xf32, #tpu.memory_space<vmem>>, vector<8x2xf32>,
    return
  }
  func.func @transform_0(%arg0: i32) -> (i32, i32) {
    %c0_i32 = arith.constant 0 : i32
    %c0_i32_0 = arith.constant 0 : i32
    return %arg0, %c0_i32 : i32, i32
  }
  func.func @transform_1(%arg0: i32) -> (i32, i32) {
    %c0_i32 = arith.constant 0 : i32
    %c0_i32_0 = arith.constant 0 : i32
    %c0_i32_1 = arith.constant 0 : i32
    return %c0_i32, %c0_i32_0 : i32, i32
  }
  func.func @transform_2(%arg0: i32) -> (i32, i32) {
    %c0_i32 = arith.constant 0 : i32
    %c0_i32_0 = arith.constant 0 : i32
    %c0_i32_1 = arith.constant 0 : i32
    return %c0_i32, %c0_i32_0 : i32, i32
  }
  func.func @transform_3(%arg0: i32) -> (i32, i32) {
    %c0_i32 = arith.constant 0 : i32
    %c0_i32_0 = arith.constant 0 : i32
    return %arg0, %c0_i32 : i32, i32
  }
}

</mosaic_0001>

<bundles_post_ra>
// kernel: binary_classifier_forward.1
= control target key start
LH: loop header
LB: loop body
LE: loop exit
PB: predicated region body
PF: predicated region fallthrough
CT: control target
= control target key end

     0   :  { %v141_v0 = vmov 0.0   ;;  %vm142_vm0 = vmmov 0   ;;  %vm26_vm1 = vcmask 261120   ;;  %vm100_vm2 = vcmask 15360   ;;  %s187_s1 = inlined_call_operand.vmem [shape: f32[32,2], index: 1, kind: input, shape index: {}]   ;;  %s188_s0 = inlined_call_operand.vmem [shape: f32[8,32], index: 0, kind: input, shape index: {}]   ;;  %s189_s2 = inlined_call_operand.vmem [shape: f32[1,2], index: 2, kind: input, shape index: {}]   ;;  %s190_s3 = inlined_call_operand.vmem [shape: f32[8,2], index: 3, kind: output, shape index: {}]  }
   0x1   :  { %124 = vmatprep.subr.mxu0 %v141_v0  ;;  %v18_v1 = vld [vmem:[%s187_s1 + $0x18] sm:$0xff]  ;;  %v17_v2 = vld [vmem:[%s187_s1 + $0x10] sm:$0xff]  ;;  %132 = vmatprep.mubr.msk.f32.mxu0 %vm142_vm0, %v141_v0  ;;  %v16_v3 = vld [vmem:[%s187_s1 + $0x8] sm:$0xff] }
   0x2   :  { %125 = vmatpush3.msra.mxu0 %v18_v1  ;;  %v15_v4 = vld [vmem:[%s187_s1] sm:$0xff] }
   0x3   :  { %126 = vmatprep.subr.mxu0 %v141_v0  ;;  %v14_v5 = vld [vmem:[%s188_s0] sm:$0xff] }
   0x4   :  { %127 = vmatpush3.msra.mxu0 %v17_v2  ;;  %v117_v6 = vld [vmem:[%s189_s2] ss:$0 sm:$0xff] }
   0x5   :  { %128 = vmatprep.subr.mxu0 %v141_v0 }
   0x6   :  { %129 = vmatpush3.msra.mxu0 %v16_v3 }
   0x7   :  { %130 = vmatprep.subr.mxu0 %v141_v0 }
   0x8   :  { %131 = vmatpush3.msra.mxu0 %v15_v4 }
   0x9   :  { %133 = vmatmul.mubr.msk.f32.vlgmr.msra.gmra.mxu0 %vm26_vm1, %v14_v5 }
  0xc9   :  { %v96_v7 = vpop.f32.mrf.mxu0 }
  0xca   :  { %v97_v8 = vadd.f32 %v117_v6, %v96_v7 }
  0xcb   :  { %v134_v9 = vpop.f32.mrf.mxu0 }
  0xcc   :  { %v101_v10 = vsel %vm100_vm2, %v97_v8, -inf }
  0xcd   :  { %102 = vmax.xlane.f32.xlu0 %v101_v10 }
 0x156   :  { %v103_v11 = vpop.xlane.xlu0 %102 }
 0x157   :  { %v104_v12 = vsub.f32 %v97_v8, %v103_v11 }
 0x159   :  { %v105_v13 = vmul.f32 1.442695, %v104_v12 }
 0x15b   :  { %137 = vpow2.f32 %v105_v13 }
 0x168   :  { %v138_v14 = vpop.eup %137 }
 0x169   :  { %v107_v15 = vsel %vm100_vm2, %v138_v14, 0.0 }
 0x16a   :  { %108 = vadd.xlane.f32.xlu0 %v107_v15 }
 0x1f3   :  { %v109_v16 = vpop.xlane.xlu0 %108 }
 0x1f4   :  { %139 = vrcp.f32 %v109_v16 }
 0x201   :  { %v140_v17 = vpop.eup %139 }
 0x202   :  { %v111_v18 = vmul.f32 %v140_v17, %v138_v14 }
 0x204   :  { %112 = vst.msk [vmem:[%s190_s3] sm:$0xff] %vm100_vm2, %v111_v18 }

</bundles_post_ra>
